<compile_context>
chip_gen: v7x
topology: tpu7x:2x2x1
jax: 0.10.0
libtpu: 0.0.40
codegen_flags: <defaults>
</compile_context>

<pallas_src>
import functools

import jax
import jax.numpy as jnp
from jax.experimental import pallas as pl
from jax.experimental.pallas import tpu as pltpu


def _round_up(n, m):
    return ((n + m - 1) // m) * m


def _classifier_kernel(x_ref, w1_ref, b1_ref, w2_ref, b2_ref, w3_ref, b3_ref,
                       out_ref, acc_ref):
    k = pl.program_id(1)

    @pl.when(k == 0)
    def _():
        acc_ref[...] = jnp.zeros_like(acc_ref)

    # fc1 partial product for this K-chunk.  x tile is streamed as f32 and
    # cast to bf16 on-chip (saves a whole HBM pass vs. converting in XLA).
    xb = x_ref[...].astype(jnp.bfloat16)
    acc_ref[...] += jnp.dot(xb, w1_ref[...], preferred_element_type=jnp.float32)

    @pl.when(k == pl.num_programs(1) - 1)
    def _():
        # fc1 bias + relu.  Dropout is the eval-mode identity.
        # TODO(synk): training-mode dropout (pltpu.prng_seed + prng_random_bits
        # Bernoulli mask, 1/(1-p) scale) not applied; inference semantics only.
        h1 = jnp.maximum(acc_ref[...] + b1_ref[...], 0.0)

        # fc2 + relu (bf16 operands for the MXU, f32 accumulation).
        h2 = jnp.dot(h1.astype(jnp.bfloat16), w2_ref[...],
                     preferred_element_type=jnp.float32)
        h2 = jnp.maximum(h2 + b2_ref[...], 0.0)

        # fc3 into a lane-dense (tb, d_out_p) logits buffer.  Padded w3
        # columns contribute 0 and the -1e30 pad bias pushes padded logit
        # lanes to -1e30, so no explicit lane mask is needed.
        logits = jnp.dot(h2.astype(jnp.bfloat16), w3_ref[...],
                         preferred_element_type=jnp.float32)
        logits = logits + b3_ref[...]

        # Numerically stable log_softmax along dim=1.
        m = jnp.max(logits, axis=1, keepdims=True)
        shifted = logits - m
        lse = jnp.log(jnp.sum(jnp.exp(shifted), axis=1, keepdims=True))
        out_ref[...] = (shifted - lse).astype(out_ref.dtype)


def prepare_params(params):
    """One-time parameter prep: pad every matmul dim to a multiple of 128 and
    cast weights to bf16 / biases to f32 rows.  Cache the result across
    forward calls so the weights are never re-converted per call."""
    w1, b1, w2, b2, w3, b3 = params
    d_in, h1 = w1.shape
    h2 = w2.shape[1]
    d_out = w3.shape[1]

    d_in_p = _round_up(d_in, 128)
    h1_p = _round_up(h1, 128)
    h2_p = _round_up(h2, 128)
    d_out_p = _round_up(d_out, 128)

    w1p = jnp.pad(w1, ((0, d_in_p - d_in), (0, h1_p - h1))).astype(jnp.bfloat16)
    b1p = jnp.pad(b1, (0, h1_p - h1)).reshape(1, h1_p).astype(jnp.float32)
    w2p = jnp.pad(w2, ((0, h1_p - h1), (0, h2_p - h2))).astype(jnp.bfloat16)
    b2p = jnp.pad(b2, (0, h2_p - h2)).reshape(1, h2_p).astype(jnp.float32)
    w3p = jnp.pad(w3, ((0, h2_p - h2), (0, d_out_p - d_out))).astype(jnp.bfloat16)
    # -1e30 pad bias == free lane mask for the padded logit columns.
    b3p = jnp.pad(b3, (0, d_out_p - d_out),
                  constant_values=-1e30).reshape(1, d_out_p).astype(jnp.float32)

    return dict(w1=w1p, b1=b1p, w2=w2p, b2=b2p, w3=w3p, b3=b3p,
                d_in=d_in, d_out=d_out)


def classifier_forward(x, prep, *, block_b=512, block_k=2048):
    """x: (B, C, H, W) float32. prep: output of prepare_params().
    Returns (B, output_size) log-probabilities (float32)."""
    w1, b1 = prep["w1"], prep["b1"]
    w2, b2 = prep["w2"], prep["b2"]
    w3, b3 = prep["w3"], prep["b3"]
    d_in, d_out = prep["d_in"], prep["d_out"]
    d_in_p, h1 = w1.shape
    h2 = w2.shape[1]
    d_out_p = w3.shape[1]

    B = x.shape[0]
    # x.view(B, -1); kept in f32 — the kernel casts to bf16 on-chip.
    x2d = x.reshape(B, -1).astype(jnp.float32)
    assert x2d.shape[1] == d_in, "flattened input does not match fc1 fan-in"

    # K (d_in) tiling: tk is a multiple of 128, capped at block_k, so the w1
    # chunk + x tile fit comfortably in VMEM even for large flatten sizes.
    tk = min(_round_up(block_k, 128), d_in_p)
    d_in_pk = _round_up(d_in_p, tk)
    nk = d_in_pk // tk

    # Batch tiling: 16-row aligned tiles (bf16 sublane packing).
    b_aligned = _round_up(B, 16)
    tb = min(block_b, b_aligned)
    # Keep >= 2 batch tiles when the batch is big enough so the "parallel"
    # axis can actually shard across v7x's two TensorCores.
    if tb >= b_aligned and b_aligned >= 32:
        tb = _round_up(b_aligned // 2, 16)
    B_pad = _round_up(b_aligned, tb)
    nb = B_pad // tb

    pad_r = B_pad - B
    pad_c = d_in_pk - d_in
    if pad_r or pad_c:
        x2d = jnp.pad(x2d, ((0, pad_r), (0, pad_c)))

    # VMEM footprint -> explicit scoped-VMEM limit (defaults: 16 MiB v5e,
    # 32 MiB v6e/v7x) so larger tiles land cleanly.
    vmem_bytes = (
        2 * tb * tk * 4                          # x tiles (f32, double-buffered)
        + 2 * tk * h1 * 2                        # w1 K-chunks (bf16)
        + 2 * (h1 * h2 + h2 * d_out_p) * 2       # w2, w3 (bf16, resident)
        + 2 * (h1 + h2 + d_out_p) * 4            # bias rows (f32)
        + 2 * tb * d_out_p * 4                   # output tiles (f32)
        + tb * h1 * 4                            # accumulator scratch
        + tb * (h1 + h2) * 4                     # activation temporaries (approx)
    )
    vmem_limit = int(min(max(vmem_bytes + (4 << 20), 16 << 20), 128 << 20))
    # TODO(synk): constant-index weight specs could use pipeline_mode=pl.Buffered(1)
    # (and x pl.Buffered(3)) to trim resident VMEM / hide x DMA on v7x.

    # Advisory cost estimate for XLA's scheduler.
    flops = 2 * B_pad * (d_in_pk * h1 + h1 * h2 + h2 * d_out_p)
    transcendentals = B_pad * d_out_p                      # exp in log_softmax
    bytes_accessed = (
        B_pad * d_in_pk * 4                                # x (f32)
        + (d_in_pk * h1 + h1 * h2 + h2 * d_out_p) * 2      # weights (bf16)
        + (h1 + h2 + d_out_p) * 4                          # biases (f32)
        + B_pad * d_out_p * 4                              # output (f32)
    )
    cost = pl.CostEstimate(flops=flops, transcendentals=transcendentals,
                           bytes_accessed=bytes_accessed)

    out_p = pl.pallas_call(
        _classifier_kernel,
        out_shape=jax.ShapeDtypeStruct((B_pad, d_out_p), jnp.float32),
        grid=(nb, nk),
        in_specs=[
            pl.BlockSpec((tb, tk), lambda i, k: (i, k)),        # x: streamed f32
            pl.BlockSpec((tk, h1), lambda i, k: (k, 0)),        # w1: K-chunks
            pl.BlockSpec((1, h1), lambda i, k: (0, 0)),         # b1 (resident)
            pl.BlockSpec((h1, h2), lambda i, k: (0, 0)),        # w2 (resident)
            pl.BlockSpec((1, h2), lambda i, k: (0, 0)),         # b2 (resident)
            pl.BlockSpec((h2, d_out_p), lambda i, k: (0, 0)),   # w3 (resident)
            pl.BlockSpec((1, d_out_p), lambda i, k: (0, 0)),    # b3 (resident)
        ],
        out_specs=pl.BlockSpec((tb, d_out_p), lambda i, k: (i, 0)),
        scratch_shapes=[pltpu.VMEM((tb, h1), jnp.float32)],     # fc1 accumulator
        compiler_params=pltpu.CompilerParams(
            dimension_semantics=("parallel", "arbitrary"),
            vmem_limit_bytes=vmem_limit),
        cost_estimate=cost,
    )(x2d, w1, b1, w2, b2, w3, b3)

    return out_p[:B, :d_out]


def init_params(key, input_size, hidden_size, output_size):
    """Deterministic init mimicking torch.nn.Linear (uniform +/- 1/sqrt(fan_in)).
    Weights stored transposed: (in_features, out_features)."""
    ks = jax.random.split(key, 6)

    def lin(kw, kb, fan_in, fan_out):
        bound = 1.0 / jnp.sqrt(jnp.float32(fan_in))
        w = jax.random.uniform(kw, (fan_in, fan_out), jnp.float32, -bound, bound)
        b = jax.random.uniform(kb, (fan_out,), jnp.float32, -bound, bound)
        return w, b

    w1, b1 = lin(ks[0], ks[1], input_size, hidden_size[0])
    w2, b2 = lin(ks[2], ks[3], hidden_size[0], hidden_size[1])
    w3, b3 = lin(ks[4], ks[5], hidden_size[1], output_size)
    return (w1, b1, w2, b2, w3, b3)


def _reference_forward(x, params):
    """Pure-JAX f32 reference (eval-mode dropout = identity)."""
    w1, b1, w2, b2, w3, b3 = params
    h = x.reshape(x.shape[0], -1)
    h = jnp.maximum(h @ w1 + b1, 0.0)
    h = jnp.maximum(h @ w2 + b2, 0.0)
    logits = h @ w3 + b3
    return jax.nn.log_softmax(logits, axis=1)


if __name__ == "__main__":
    key = jax.random.PRNGKey(0)
    kx, kp = jax.random.split(key)

    # Small, module-consistent shapes: batch=2, channels=4, spatial=16x16
    B, C, H, W = 2, 4, 16, 16
    input_size = C * H * W            # 1024 after flatten
    hidden_size = (256, 128)
    output_size = 10

    x = jax.random.normal(kx, (B, C, H, W), dtype=jnp.float32)
    params = init_params(kp, input_size, hidden_size, output_size)

    prep = prepare_params(params)     # one-time pad/cast; cached across calls
    out = classifier_forward(x, prep)
    out = jax.block_until_ready(out)

    # sanity: shape, log_softmax rows sum to ~1 in prob space, matches f32 ref
    assert out.shape == (B, output_size)
    assert jnp.allclose(jnp.sum(jnp.exp(out), axis=1), 1.0, atol=1e-4)
    ref = _reference_forward(x, params)
    assert jnp.allclose(out, ref, atol=0.1), float(jnp.max(jnp.abs(out - ref)))

    print("KERNEL_OK")
</pallas_src>

<mosaic_0001>
module attributes {stable_mosaic.version = 11 : i64} {
  func.func @_classifier_kernel(%arg0: i32, %arg1: i32, %arg2: memref<16x1024xf32, #tpu.memory_space<vmem>>, %arg3: memref<1024x256xbf16, #tpu.memory_space<vmem>>, %arg4: memref<1x256xf32, #tpu.memory_space<vmem>>, %arg5: memref<256x128xbf16, #tpu.memory_space<vmem>>, %arg6: memref<1x128xf32, #tpu.memory_space<vmem>>, %arg7: memref<128x128xbf16, #tpu.memory_space<vmem>>, %arg8: memref<1x128xf32, #tpu.memory_space<vmem>>, %arg9: memref<16x128xf32, #tpu.memory_space<vmem>>, %arg10: memref<16x256xf32, #tpu.memory_space<vmem>>) attributes {dimension_semantics = [#tpu.dimension_semantics<parallel>, #tpu.dimension_semantics<arbitrary>], iteration_bounds = array<i64: 1, 1>, scalar_prefetch = 0 : i64, scratch_operands = 1 : i64, tpu.core_type = #tpu.core_type<tc>, window_params = [{transform_indices = @transform_0, window_bounds = array<i64: 16, 1024>}, {transform_indices = @transform_1, window_bounds = array<i64: 1024, 256>}, {pipeline_mode = #tpu.pipeline_mode<synchronous>, transform_indices = @transform_2, window_bounds = array<i64: 1, 256>}, {pipeline_mode = #tpu.pipeline_mode<synchronous>, transform_indices = @transform_3, window_bounds = array<i64: 256, 128>}, {pipeline_mode = #tpu.pipeline_mode<synchronous>, transform_indices = @transform_4, window_bounds = array<i64: 1, 128>}, {pipeline_mode = #tpu.pipeline_mode<synchronous>, transform_indices = @transform_5, window_bounds = array<i64: 128, 128>}, {pipeline_mode = #tpu.pipeline_mode<synchronous>, transform_indices = @transform_6, window_bounds = array<i64: 1, 128>}, {transform_indices = @transform_7, window_bounds = array<i64: 16, 128>}]} {
    %c0_i32 = arith.constant 0 : i32
    %0 = arith.cmpi eq, %arg1, %c0_i32 : i32
    %1 = arith.extui %0 : i1 to i32
    %c0_i32_0 = arith.constant 0 : i32
    %2 = arith.cmpi ne, %1, %c0_i32_0 : i32
    scf.if %2 {
      %cst_10 = arith.constant 0.000000e+00 : f32
      %13 = vector.broadcast %cst_10 : f32 to vector<16x256xf32>
      %c0_11 = arith.constant 0 : index
      %c0_12 = arith.constant 0 : index
      %14 = vector.load %arg10[%c0_11, %c0_12] : memref<16x256xf32, #tpu.memory_space<vmem>>, vector<16x256xf32>
      tpu.vector_store %arg10[%c0_11, %c0_12], %13 {strides = array<i32>} : memref<16x256xf32, #tpu.memory_space<vmem>>, vector<16x256xf32>,
    } else {
    }
    %c0 = arith.constant 0 : index
    %c0_1 = arith.constant 0 : index
    %3 = vector.load %arg2[%c0, %c0_1] : memref<16x1024xf32, #tpu.memory_space<vmem>>, vector<16x1024xf32>
    %4 = arith.truncf %3 : vector<16x1024xf32> to vector<16x1024xbf16>
    %c0_2 = arith.constant 0 : index
    %c0_3 = arith.constant 0 : index
    %5 = vector.load %arg10[%c0_2, %c0_3] : memref<16x256xf32, #tpu.memory_space<vmem>>, vector<16x256xf32>
    %c0_4 = arith.constant 0 : index
    %c0_5 = arith.constant 0 : index
    %6 = vector.load %arg3[%c0_4, %c0_5] : memref<1024x256xbf16, #tpu.memory_space<vmem>>, vector<1024x256xbf16>
    %cst = arith.constant dense<0.000000e+00> : vector<16x256xf32>
    %7 = tpu.matmul %4, %6, %cst {dimension_numbers = #tpu.dot_dimension_numbers<[1], [0], [0], [1], [0, 0, 1, 1], [], []>} : vector<16x1024xbf16>, vector<1024x256xbf16>, vector<16x256xf32> -> vector<16x256xf32>
    %8 = arith.addf %5, %7 : vector<16x256xf32>
    %c0_6 = arith.constant 0 : index
    %c0_7 = arith.constant 0 : index
    %9 = vector.load %arg10[%c0_6, %c0_7] : memref<16x256xf32, #tpu.memory_space<vmem>>, vector<16x256xf32>
    tpu.vector_store %arg10[%c0_6, %c0_7], %8 {strides = array<i32>} : memref<16x256xf32, #tpu.memory_space<vmem>>, vector<16x256xf32>,
    %c0_i32_8 = arith.constant 0 : i32
    %10 = arith.cmpi eq, %arg1, %c0_i32_8 : i32
    %11 = arith.extui %10 : i1 to i32
    %c0_i32_9 = arith.constant 0 : i32
    %12 = arith.cmpi ne, %11, %c0_i32_9 : i32
    scf.if %12 {
      %c0_10 = arith.constant 0 : index
      %c0_11 = arith.constant 0 : index
      %13 = vector.load %arg10[%c0_10, %c0_11] : memref<16x256xf32, #tpu.memory_space<vmem>>, vector<16x256xf32>
      %c0_12 = arith.constant 0 : index
      %c0_13 = arith.constant 0 : index
      %14 = vector.load %arg4[%c0_12, %c0_13] : memref<1x256xf32, #tpu.memory_space<vmem>>, vector<1x256xf32>
      %15 = vector.broadcast %14 : vector<1x256xf32> to vector<16x256xf32>
      %16 = arith.addf %13, %15 : vector<16x256xf32>
      %cst_14 = arith.constant 0.000000e+00 : f32
      %17 = vector.broadcast %cst_14 : f32 to vector<16x256xf32>
      %18 = arith.maximumf %16, %17 : vector<16x256xf32>
      %19 = arith.truncf %18 : vector<16x256xf32> to vector<16x256xbf16>
      %c0_15 = arith.constant 0 : index
      %c0_16 = arith.constant 0 : index
      %20 = vector.load %arg5[%c0_15, %c0_16] : memref<256x128xbf16, #tpu.memory_space<vmem>>, vector<256x128xbf16>
      %cst_17 = arith.constant dense<0.000000e+00> : vector<16x128xf32>
      %21 = tpu.matmul %19, %20, %cst_17 {dimension_numbers = #tpu.dot_dimension_numbers<[1], [0], [0], [1], [0, 0, 1, 1], [], []>} : vector<16x256xbf16>, vector<256x128xbf16>, vector<16x128xf32> -> vector<16x128xf32>
      %c0_18 = arith.constant 0 : index
      %c0_19 = arith.constant 0 : index
      %22 = vector.load %arg6[%c0_18, %c0_19] : memref<1x128xf32, #tpu.memory_space<vmem>>, vector<1x128xf32>
      %23 = vector.broadcast %22 : vector<1x128xf32> to vector<16x128xf32>
      %24 = arith.addf %21, %23 : vector<16x128xf32>
      %cst_20 = arith.constant 0.000000e+00 : f32
      %25 = vector.broadcast %cst_20 : f32 to vector<16x128xf32>
      %26 = arith.maximumf %24, %25 : vector<16x128xf32>
      %27 = arith.truncf %26 : vector<16x128xf32> to vector<16x128xbf16>
      %c0_21 = arith.constant 0 : index
      %c0_22 = arith.constant 0 : index
      %28 = vector.load %arg7[%c0_21, %c0_22] : memref<128x128xbf16, #tpu.memory_space<vmem>>, vector<128x128xbf16>
      %cst_23 = arith.constant dense<0.000000e+00> : vector<16x128xf32>
      %29 = tpu.matmul %27, %28, %cst_23 {dimension_numbers = #tpu.dot_dimension_numbers<[1], [0], [0], [1], [0, 0, 1, 1], [], []>} : vector<16x128xbf16>, vector<128x128xbf16>, vector<16x128xf32> -> vector<16x128xf32>
      %c0_24 = arith.constant 0 : index
      %c0_25 = arith.constant 0 : index
      %30 = vector.load %arg8[%c0_24, %c0_25] : memref<1x128xf32, #tpu.memory_space<vmem>>, vector<1x128xf32>
      %31 = vector.broadcast %30 : vector<1x128xf32> to vector<16x128xf32>
      %32 = arith.addf %29, %31 : vector<16x128xf32>
      %cst_26 = arith.constant dense<0xFF800000> : vector<16xf32>
      %33 = vector.multi_reduction <maximumf>, %32, %cst_26 [1] : vector<16x128xf32> to vector<16xf32>
      %34 = vector.shape_cast %33 : vector<16xf32> to vector<16x1xf32>
      %35 = vector.broadcast %34 : vector<16x1xf32> to vector<16x128xf32>
      %36 = arith.subf %32, %35 : vector<16x128xf32>
      %37 = math.exp %36 : vector<16x128xf32>
      %cst_27 = arith.constant dense<0.000000e+00> : vector<16xf32>
      %38 = vector.multi_reduction <add>, %37, %cst_27 [1] : vector<16x128xf32> to vector<16xf32>
      %39 = vector.shape_cast %38 : vector<16xf32> to vector<16x1xf32>
      %40 = math.log %39 : vector<16x1xf32>
      %41 = vector.broadcast %40 : vector<16x1xf32> to vector<16x128xf32>
      %42 = arith.subf %36, %41 : vector<16x128xf32>
      %c0_28 = arith.constant 0 : index
      %c0_29 = arith.constant 0 : index
      %43 = vector.load %arg9[%c0_28, %c0_29] : memref<16x128xf32, #tpu.memory_space<vmem>>, vector<16x128xf32>
      tpu.vector_store %arg9[%c0_28, %c0_29], %42 {strides = array<i32>} : memref<16x128xf32, #tpu.memory_space<vmem>>, vector<16x128xf32>,
    } else {
    }
    return
  }
  func.func @transform_0(%arg0: i32, %arg1: i32) -> (i32, i32) {
    %c0_i32 = arith.constant 0 : i32
    return %arg0, %arg1 : i32, i32
  }
  func.func @transform_1(%arg0: i32, %arg1: i32) -> (i32, i32) {
    %c0_i32 = arith.constant 0 : i32
    %c0_i32_0 = arith.constant 0 : i32
    return %arg1, %c0_i32 : i32, i32
  }
  func.func @transform_2(%arg0: i32, %arg1: i32) -> (i32, i32) {
    %c0_i32 = arith.constant 0 : i32
    %c0_i32_0 = arith.constant 0 : i32
    %c0_i32_1 = arith.constant 0 : i32
    return %c0_i32, %c0_i32_0 : i32, i32
  }
  func.func @transform_3(%arg0: i32, %arg1: i32) -> (i32, i32) {
    %c0_i32 = arith.constant 0 : i32
    %c0_i32_0 = arith.constant 0 : i32
    %c0_i32_1 = arith.constant 0 : i32
    return %c0_i32, %c0_i32_0 : i32, i32
  }
  func.func @transform_4(%arg0: i32, %arg1: i32) -> (i32, i32) {
    %c0_i32 = arith.constant 0 : i32
    %c0_i32_0 = arith.constant 0 : i32
    %c0_i32_1 = arith.constant 0 : i32
    return %c0_i32, %c0_i32_0 : i32, i32
  }
  func.func @transform_5(%arg0: i32, %arg1: i32) -> (i32, i32) {
    %c0_i32 = arith.constant 0 : i32
    %c0_i32_0 = arith.constant 0 : i32
    %c0_i32_1 = arith.constant 0 : i32
    return %c0_i32, %c0_i32_0 : i32, i32
  }
  func.func @transform_6(%arg0: i32, %arg1: i32) -> (i32, i32) {
    %c0_i32 = arith.constant 0 : i32
    %c0_i32_0 = arith.constant 0 : i32
    %c0_i32_1 = arith.constant 0 : i32
    return %c0_i32, %c0_i32_0 : i32, i32
  }
  func.func @transform_7(%arg0: i32, %arg1: i32) -> (i32, i32) {
    %c0_i32 = arith.constant 0 : i32
    %c0_i32_0 = arith.constant 0 : i32
    return %arg0, %c0_i32 : i32, i32
  }
}

</mosaic_0001>

<bundles_post_ra>
// kernel: tpu_custom_call.1
= control target key start
LH: loop header
LB: loop body
LE: loop exit
PB: predicated region body
PF: predicated region fallthrough
CT: control target
= control target key end

     0   :  { %12 = vsyncpa [#allocation4], 0  ;;  %s2131_s0 = inlined_call_operand.hbm [shape: f32[16,1024], index: 0, kind: input, shape index: {}]   ;;  %s2132_s1 = inlined_call_operand.hbm [shape: bf16[1024,256], index: 1, kind: input, shape index: {}]   ;;  %s2133_s2 = inlined_call_operand.vmem [shape: f32[1,256], index: 2, kind: input, shape index: {}]   ;;  %s2134_s3 = inlined_call_operand.hbm [shape: bf16[256,128], index: 3, kind: input, shape index: {}]   ;;  %s2135_s4 = inlined_call_operand.vmem [shape: f32[1,128], index: 4, kind: input, shape index: {}]   ;;  %s2136_s5 = inlined_call_operand.hbm [shape: bf16[128,128], index: 5, kind: input, shape index: {}]   ;;  %s2137_s6 = inlined_call_operand.vmem [shape: f32[1,128], index: 6, kind: input, shape index: {}]   ;;  %s2138_s7 = inlined_call_operand.hbm [shape: f32[16,128], index: 7, kind: output, shape index: {}]  }
   0x1   :  { %13 = vsyncpa [#allocation7], 0 }
   0x2   :  { %14 = vsyncpa [#allocation10], 0 }
   0x3   :  { %15 = vsyncpa [#allocation5], 0  ;;  %s1999_s24 = smov [#allocation6]   ;;  %s1881_s28 = scalar_lea.hbm %s2132_s1, 16384 }
   0x4   :  { %s33_s25 = sshll.u32 %s1999_s24, 4  ;;  %p1882_p0 = scmp.ne.s32.totalorder %s2132_s1, %s1881_s28  ;;  %s34_s25 = int_to_ptr.vmem [resolvable:$true] %s33_s25 }
   0x5   :  { %p1885_p1 = scmp.lt.u32.totalorder %s1881_s28, %s2132_s1 }
   0x7   :  { %p1887_p2 = pnand %p1885_p1, %p1882_p0 }
   0x9   :  { %1890 = shalt.err (!%p1887_p2)
}
   0xa   :  { %s1891_s10 = scalar_lea.vmem %s34_s25, 16384  ;;  %p1896_p4 = scmp.lt.s32.totalorder %s34_s25, %s34_s25 }
   0xb   :  { %p1892_p3 = scmp.ne.s32.totalorder %s34_s25, %s1891_s10  ;;  %p1897_p5 = scmp.lt.s32.totalorder %s1891_s10, %s1891_s10 }
   0xd   :  { %p1898_p6 = por %p1897_p5, %p1896_p4 }
   0xf   :  { %p1899_p7 = pnand %p1898_p6, %p1892_p3 }
  0x11   :  { %1902 = shalt.err (!%p1899_p7)
}
  0x12   :  { %s2000_s11 = smov 128   ;;  %s2001_s12 = smov 8  }
  0x13   :  { %39 = dma.hbm_to_vmem [thread:$0]  %s2132_s1, 16384, %s34_s25, [#allocation7], %s2000_s11, %s2000_s11, %s2001_s12  }
  0x14   :  { %s2002_s15 = smov [#allocation3]   ;;  %s1903_s19 = scalar_lea.hbm %s2131_s0, 2048 }
  0x15   :  { %s21_s16 = sshll.u32 %s2002_s15, 4  ;;  %p1904_p8 = scmp.ne.s32.totalorder %s2131_s0, %s1903_s19  ;;  %s22_s16 = int_to_ptr.vmem [resolvable:$true] %s21_s16 }
  0x16   :  { %p1907_p9 = scmp.lt.u32.totalorder %s1903_s19, %s2131_s0 }
  0x18   :  { %p1909_p10 = pnand %p1907_p9, %p1904_p8 }
  0x1a   :  { %1912 = shalt.err (!%p1909_p10)
}
  0x1b   :  { %s1913_s24 = scalar_lea.vmem %s22_s16, 2048  ;;  %p1918_p12 = scmp.lt.s32.totalorder %s22_s16, %s22_s16 }
  0x1c   :  { %p1914_p11 = scmp.ne.s32.totalorder %s22_s16, %s1913_s24  ;;  %p1919_p13 = scmp.lt.s32.totalorder %s1913_s24, %s1913_s24 }
  0x1e   :  { %p1920_p0 = por %p1919_p13, %p1918_p12 }
  0x20   :  { %p1921_p1 = pnand %p1920_p0, %p1914_p11 }
  0x22   :  { %1924 = shalt.err (!%p1921_p1)
}
  0x23   :  { %s2003_s1 = smov 1024   ;;  %s2004_s25 = smov 64  }
  0x24   :  { %27 = dma.hbm_to_vmem [thread:$0]  %s2131_s0, 2048, %s22_s16, [#allocation4], %s2003_s1, %s2003_s1, %s2004_s25  }
  0x25   :  { %s2005_s28 = smov [#allocation8]   ;;  %s2006_s30 = smov [#allocation9]  }
  0x26   :  { %s47_s29 = sshll.u32 %s2005_s28, 4  ;;  %s61_s8 = sshll.u32 %s2006_s30, 4  ;;  %s48_s29 = int_to_ptr.vmem [resolvable:$true] %s47_s29  ;;  %s62_s8 = int_to_ptr.vmem [resolvable:$true] %s61_s8 }
  0x27   :  { %s1925_s13 = scalar_lea.hbm %s2134_s3, 2048 }
  0x28   :  { %p1926_p2 = scmp.ne.s32.totalorder %s2134_s3, %s1925_s13  ;;  %p1929_p3 = scmp.lt.u32.totalorder %s1925_s13, %s2134_s3 }
  0x2a   :  { %p1931_p4 = pnand %p1929_p3, %p1926_p2 }
  0x2c   :  { %1934 = shalt.err (!%p1931_p4)
}
  0x2d   :  { %s1935_s0 = scalar_lea.vmem %s48_s29, 2048  ;;  %p1940_p6 = scmp.lt.s32.totalorder %s48_s29, %s48_s29 }
  0x2e   :  { %p1936_p5 = scmp.ne.s32.totalorder %s48_s29, %s1935_s0  ;;  %p1941_p7 = scmp.lt.s32.totalorder %s1935_s0, %s1935_s0 }
  0x30   :  { %p1942_p8 = por %p1941_p7, %p1940_p6 }
  0x32   :  { %p1943_p9 = pnand %p1942_p8, %p1936_p5 }
  0x34   :  { %1946 = shalt.err (!%p1943_p9)
}
  0x35   :  { %s2007_s16 = smov 4   ;;  %s1947_s23 = scalar_lea.hbm %s2136_s5, 1024 }
  0x36   :  { %53 = dma.hbm_to_vmem [thread:$0]  %s2134_s3, 2048, %s48_s29, [#allocation7], %s2004_s25, %s2004_s25, %s2007_s16  }
  0x37   :  { %p1948_p10 = scmp.ne.s32.totalorder %s2136_s5, %s1947_s23  ;;  %p1951_p11 = scmp.lt.u32.totalorder %s1947_s23, %s2136_s5 }
  0x39   :  { %p1953_p12 = pnand %p1951_p11, %p1948_p10 }
  0x3b   :  { %1956 = shalt.err (!%p1953_p12)
}
  0x3c   :  { %s1957_s28 = scalar_lea.vmem %s62_s8, 1024  ;;  %p1962_p0 = scmp.lt.s32.totalorder %s62_s8, %s62_s8 }
  0x3d   :  { %p1958_p13 = scmp.ne.s32.totalorder %s62_s8, %s1957_s28  ;;  %p1963_p1 = scmp.lt.s32.totalorder %s1957_s28, %s1957_s28 }
  0x3f   :  { %p1964_p2 = por %p1963_p1, %p1962_p0 }
  0x41   :  { %p1965_p3 = pnand %p1964_p2, %p1958_p13 }
  0x43   :  { %1968 = shalt.err (!%p1965_p3)
}
  0x44   :  { %67 = dma.hbm_to_vmem [thread:$0]  %s2136_s5, 1024, %s62_s8, [#allocation10], %s2004_s25, %s2004_s25, %s2007_s16  }
  0x45   :  { %1991 = dma.done.wait [#allocation4], 2048  }
  0x46   :  { %1992 = vsyncadd [#allocation4], 4294965248 }
  0x47   :  { %1993 = dma.done.wait [#allocation7], 18432  }
  0x48   :  { %1994 = vsyncadd [#allocation7], 4294948864 }
  0x49   :  { %1995 = dma.done.wait [#allocation10], 1024  }
  0x4a   :  { %1996 = vsyncadd [#allocation10], 4294966272  ;;  %v1657_v0 = vld [vmem:[#allocation6 + $0x104] ss:$8 sps:$4 sm:$0xff]   ;;  %v1659_v1 = vld [vmem:[#allocation6 + $0x100] ss:$8 sps:$4 sm:$0xff]  }
  0x4b   :  { %930 = vmatprep.subr.bf16.mxu0 %v1657_v0  ;;  %v1660_v2 = vld [vmem:[#allocation6 + $0x114] ss:$8 sps:$4 sm:$0xff]   ;;  %v1662_v3 = vld [vmem:[#allocation6 + $0x110] ss:$8 sps:$4 sm:$0xff]   ;;  %v1663_v4 = vld [vmem:[#allocation6 + $0x124] ss:$8 sps:$4 sm:$0xff]  }
  0x4c   :  { %931 = vmatpush1.bf16.msra.mxu0 %v1659_v1  ;;  %v1665_v5 = vld [vmem:[#allocation6 + $0x120] ss:$8 sps:$4 sm:$0xff]   ;;  %v1666_v6 = vld [vmem:[#allocation6 + $0x134] ss:$8 sps:$4 sm:$0xff]   ;;  %v1668_v7 = vld [vmem:[#allocation6 + $0x130] ss:$8 sps:$4 sm:$0xff]  }
  0x4d   :  { %932 = vmatprep.subr.bf16.mxu0 %v1660_v2  ;;  %v1669_v8 = vld [vmem:[#allocation6 + $0x144] ss:$8 sps:$4 sm:$0xff]   ;;  %v1671_v9 = vld [vmem:[#allocation6 + $0x140] ss:$8 sps:$4 sm:$0xff]   ;;  %v1672_v10 = vld [vmem:[#allocation6 + $0x154] ss:$8 sps:$4 sm:$0xff]  }
  0x4e   :  { %v1674_v11 = vld [vmem:[#allocation6 + $0x150] ss:$8 sps:$4 sm:$0xff]   ;;  %v1675_v12 = vld [vmem:[#allocation6 + $0x164] ss:$8 sps:$4 sm:$0xff]   ;;  %v1677_v16 = vld [vmem:[#allocation6 + $0x160] ss:$8 sps:$4 sm:$0xff]  }
  0x4f   :  { %v94_v13 = vld [vmem:[#allocation3 + $0x18] sm:$0xff]  ;;  %v1681_v19 = vld [vmem:[#allocation6 + $0x184] ss:$8 sps:$4 sm:$0xff]   ;;  %v1683_v20 = vld [vmem:[#allocation6 + $0x180] ss:$8 sps:$4 sm:$0xff]   ;;  %vm2009_vm0 = vmmov 0  }
  0x50   :  { %933 = vmatpush1.bf16.msra.mxu0 %v1662_v3  ;;  %v102_v14 = vld [vmem:[#allocation3 + $0x58] sm:$0xff]  ;;  %v1687_v23 = vld [vmem:[#allocation6 + $0x1a4] ss:$8 sps:$4 sm:$0xff]   ;;  %v1689_v24 = vld [vmem:[#allocation6 + $0x1a0] ss:$8 sps:$4 sm:$0xff]  }
  0x51   :  { %934 = vmatprep.subr.bf16.mxu0 %v1663_v4  ;;  %v110_v15 = vpack.c.bf16 %v102_v14, %v94_v13  ;;  %v1678_v17 = vld [vmem:[#allocation6 + $0x174] ss:$8 sps:$4 sm:$0xff]   ;;  %v1680_v18 = vld [vmem:[#allocation6 + $0x170] ss:$8 sps:$4 sm:$0xff]   ;;  %v1693_v27 = vld [vmem:[#allocation6 + $0x1c4] ss:$8 sps:$4 sm:$0xff]  }
  0x52   :  { %v1684_v21 = vld [vmem:[#allocation6 + $0x194] ss:$8 sps:$4 sm:$0xff]   ;;  %v1686_v22 = vld [vmem:[#allocation6 + $0x190] ss:$8 sps:$4 sm:$0xff]   ;;  %v1753_v28 = vld [vmem:[#allocation6 + $0x4] ss:$8 sps:$4 sm:$0xff]  }
  0x53   :  { %962 = vmatprep.mubr.bf16.mxu0 %v110_v15  ;;  %v1690_v25 = vld [vmem:[#allocation6 + $0x1b4] ss:$8 sps:$4 sm:$0xff]   ;;  %v1692_v26 = vld [vmem:[#allocation6 + $0x1b0] ss:$8 sps:$4 sm:$0xff]   ;;  %v1755_v29 = vld [vmem:[#allocation6] ss:$8 sps:$4 sm:$0xff]   ;;  %887 = vmatprep.subr.bf16.mxu1 %v1753_v28 }
  0x54   :  { %935 = vmatpush1.bf16.msra.mxu0 %v1665_v5  ;;  %v1695_v30 = vld [vmem:[#allocation6 + $0x1c0] ss:$8 sps:$4 sm:$0xff]   ;;  %888 = vmatpush1.bf16.msra.mxu1 %v1755_v29  ;;  %v1696_v31 = vld [vmem:[#allocation6 + $0x1d4] ss:$8 sps:$4 sm:$0xff]   ;;  %v1761_v33 = vld [vmem:[#allocation6 + $0x10] ss:$8 sps:$4 sm:$0xff]  }
  0x55   :  { %936 = vmatprep.subr.bf16.mxu0 %v1666_v6  ;;  %v1759_v32 = vld [vmem:[#allocation6 + $0x14] ss:$8 sps:$4 sm:$0xff]   ;;  %v1698_v34 = vld [vmem:[#allocation6 + $0x1d0] ss:$8 sps:$4 sm:$0xff]   ;;  %v1765_v35 = vld [vmem:[#allocation6 + $0x24] ss:$8 sps:$4 sm:$0xff]  }
  0x56   :  { %889 = vmatprep.subr.bf16.mxu1 %v1759_v32  ;;  %v1767_v36 = vld [vmem:[#allocation6 + $0x20] ss:$8 sps:$4 sm:$0xff]   ;;  %v1699_v37 = vld [vmem:[#allocation6 + $0x1e4] ss:$8 sps:$4 sm:$0xff]   ;;  %v1771_v39 = vld [vmem:[#allocation6 + $0x34] ss:$8 sps:$4 sm:$0xff]  }
  0x57   :  { %v1701_v38 = vld [vmem:[#allocation6 + $0x1e0] ss:$8 sps:$4 sm:$0xff]   ;;  %v1702_v40 = vld [vmem:[#allocation6 + $0x1f4] ss:$8 sps:$4 sm:$0xff]   ;;  %v1773_v41 = vld [vmem:[#allocation6 + $0x30] ss:$8 sps:$4 sm:$0xff]  }
  0x58   :  { %937 = vmatpush1.bf16.msra.mxu0 %v1668_v7  ;;  %890 = vmatpush1.bf16.msra.mxu1 %v1761_v33  ;;  %v1777_v42 = vld [vmem:[#allocation6 + $0x44] ss:$8 sps:$4 sm:$0xff]   ;;  %v1704_v43 = vld [vmem:[#allocation6 + $0x1f0] ss:$8 sps:$4 sm:$0xff]   ;;  %v1779_v49 = vld [vmem:[#allocation6 + $0x40] ss:$8 sps:$4 sm:$0xff]  }
  0x59   :  { %938 = vmatprep.subr.bf16.mxu0 %v1669_v8  ;;  %891 = vmatprep.subr.bf16.mxu1 %v1765_v35  ;;  %v93_v44 = vld [vmem:[#allocation3 + $0x10] sm:$0xff]  ;;  %v1707_v45 = vld [vmem:[#allocation6 + $0x204] ss:$8 sps:$4 sm:$0xff]   ;;  %v1705_v52 = vld [vmem:[#allocation6 + $0x200] ss:$8 sps:$4 sm:$0xff]  }
  0x5a   :  { %v101_v46 = vld [vmem:[#allocation3 + $0x50] sm:$0xff]  ;;  %v96_v47 = vld [vmem:[#allocation3 + $0x28] sm:$0xff]  ;;  %v91_v35 = vld [vmem:[#allocation3] sm:$0xff] }
  0x5b   :  { %v104_v48 = vld [vmem:[#allocation3 + $0x68] sm:$0xff]  ;;  %v1783_v50 = vld [vmem:[#allocation6 + $0x54] ss:$8 sps:$4 sm:$0xff]   ;;  %v109_v51 = vpack.c.bf16 %v101_v46, %v93_v44  ;;  %v1785_v55 = vld [vmem:[#allocation6 + $0x50] ss:$8 sps:$4 sm:$0xff]  }
  0x5c   :  { %939 = vmatpush1.bf16.msra.mxu0 %v1671_v9  ;;  %892 = vmatpush1.bf16.msra.mxu1 %v1767_v36  ;;  %v1710_v53 = vld [vmem:[#allocation6 + $0x214] ss:$8 sps:$4 sm:$0xff]   ;;  %v112_v54 = vpack.c.bf16 %v104_v48, %v96_v47  ;;  %v1789_v56 = vld [vmem:[#allocation6 + $0x64] ss:$8 sps:$4 sm:$0xff]   ;;  %v1708_v57 = vld [vmem:[#allocation6 + $0x210] ss:$8 sps:$4 sm:$0xff]  }
  0x5d   :  { %940 = vmatprep.subr.bf16.mxu0 %v1672_v10  ;;  %893 = vmatprep.subr.bf16.mxu1 %v1771_v39  ;;  %v1713_v58 = vld [vmem:[#allocation6 + $0x224] ss:$8 sps:$4 sm:$0xff]   ;;  %v1791_v59 = vld [vmem:[#allocation6 + $0x60] ss:$8 sps:$4 sm:$0xff]   ;;  %v1795_v60 = vld [vmem:[#allocation6 + $0x74] ss:$8 sps:$4 sm:$0xff]  }
  0x5e   :  { %v1711_v61 = vld [vmem:[#allocation6 + $0x220] ss:$8 sps:$4 sm:$0xff]   ;;  %v1716_v62 = vld [vmem:[#allocation6 + $0x234] ss:$8 sps:$4 sm:$0xff]   ;;  %v1797_v63 = vld [vmem:[#allocation6 + $0x70] ss:$8 sps:$4 sm:$0xff]  }
  0x5f   :  { %v1801_v0 = vld [vmem:[#allocation6 + $0x84] ss:$8 sps:$4 sm:$0xff]   ;;  %v1714_v1 = vld [vmem:[#allocation6 + $0x230] ss:$8 sps:$4 sm:$0xff]   ;;  %v1803_v3 = vld [vmem:[#allocation6 + $0x80] ss:$8 sps:$4 sm:$0xff]  }
  0x60   :  { %941 = vmatpush1.bf16.msra.mxu0 %v1674_v11  ;;  %894 = vmatpush1.bf16.msra.mxu1 %v1773_v41  ;;  %v1719_v2 = vld [vmem:[#allocation6 + $0x244] ss:$8 sps:$4 sm:$0xff]   ;;  %v1807_v4 = vld [vmem:[#allocation6 + $0x94] ss:$8 sps:$4 sm:$0xff]   ;;  %v1717_v5 = vld [vmem:[#allocation6 + $0x240] ss:$8 sps:$4 sm:$0xff]  }
  0x61   :  { %942 = vmatprep.subr.bf16.mxu0 %v1675_v12  ;;  %895 = vmatprep.subr.bf16.mxu1 %v1777_v42  ;;  %v1722_v6 = vld [vmem:[#allocation6 + $0x254] ss:$8 sps:$4 sm:$0xff]   ;;  %v1809_v7 = vld [vmem:[#allocation6 + $0x90] ss:$8 sps:$4 sm:$0xff]   ;;  %v1813_v8 = vld [vmem:[#allocation6 + $0xa4] ss:$8 sps:$4 sm:$0xff]  }
  0x62   :  { %v1720_v9 = vld [vmem:[#allocation6 + $0x250] ss:$8 sps:$4 sm:$0xff]   ;;  %v1725_v10 = vld [vmem:[#allocation6 + $0x264] ss:$8 sps:$4 sm:$0xff]   ;;  %v1815_v11 = vld [vmem:[#allocation6 + $0xa0] ss:$8 sps:$4 sm:$0xff]  }
  0x63   :  { %v1819_v12 = vld [vmem:[#allocation6 + $0xb4] ss:$8 sps:$4 sm:$0xff]   ;;  %v1723_v13 = vld [vmem:[#allocation6 + $0x260] ss:$8 sps:$4 sm:$0xff]   ;;  %v1837_v28 = vld [vmem:[#allocation6 + $0xe4] ss:$8 sps:$4 sm:$0xff]  }
  0x64   :  { %943 = vmatpush1.bf16.msra.mxu0 %v1677_v16  ;;  %896 = vmatpush1.bf16.msra.mxu1 %v1779_v49  ;;  %v92_v14 = vld [vmem:[#allocation3 + $0x8] sm:$0xff]  ;;  %v1728_v16 = vld [vmem:[#allocation6 + $0x274] ss:$8 sps:$4 sm:$0xff]   ;;  %v99_v36 = vld [vmem:[#allocation3 + $0x40] sm:$0xff] }
  0x65   :  { %944 = vmatprep.subr.bf16.mxu0 %v1678_v17  ;;  %897 = vmatprep.subr.bf16.mxu1 %v1783_v50  ;;  %v100_v15 = vld [vmem:[#allocation3 + $0x48] sm:$0xff]  ;;  %v1821_v17 = vld [vmem:[#allocation6 + $0xb0] ss:$8 sps:$4 sm:$0xff]   ;;  %v1740_v33 = vld [vmem:[#allocation6 + $0x2b4] ss:$8 sps:$4 sm:$0xff]   ;;  %v107_v41 = vpack.c.bf16 %v99_v36, %v91_v35 }
  0x66   :  { %v1737_v29 = vld [vmem:[#allocation6 + $0x2a4] ss:$8 sps:$4 sm:$0xff]   ;;  %v1735_v32 = vld [vmem:[#allocation6 + $0x2a0] ss:$8 sps:$4 sm:$0xff]   ;;  %v1746_v44 = vld [vmem:[#allocation6 + $0x2d4] ss:$8 sps:$4 sm:$0xff]  }
  0x67   :  { %v1743_v39 = vld [vmem:[#allocation6 + $0x2c4] ss:$8 sps:$4 sm:$0xff]   ;;  %v1853_v46 = vld [vmem:[#allocation8 + $0x50] sm:$0xff]   ;;  %v1855_v50 = vld [vmem:[#allocation8 + $0x58] sm:$0xff]  }
  0x68   :  { %945 = vmatpush1.bf16.msra.mxu0 %v1680_v18  ;;  %898 = vmatpush1.bf16.msra.mxu1 %v1785_v55  ;;  %v108_v18 = vpack.c.bf16 %v100_v15, %v92_v14  ;;  %v1851_v42 = vld [vmem:[#allocation8 + $0x48] sm:$0xff]   ;;  %v1744_v47 = vld [vmem:[#allocation6 + $0x2d0] ss:$8 sps:$4 sm:$0xff]   ;;  %v95_v55 = vld [vmem:[#allocation3 + $0x20] sm:$0xff] }
  0x69   :  { %946 = vmatprep.subr.bf16.mxu0 %v1681_v19  ;;  %899 = vmatprep.subr.bf16.mxu1 %v1789_v56  ;;  %v1825_v19 = vld [vmem:[#allocation6 + $0xc4] ss:$8 sps:$4 sm:$0xff]   ;;  %v1854_v49 = vld [vmem:[#allocation8 + $0x10] sm:$0xff]   ;;  %v1804_v14 = vld [vmem:[#allocation6 + $0x380] ss:$8 sps:$4 sm:$0xff]  }
  0x6a   :  { %919 = vmatprep.mubr.bf16.mxu1 %v108_v18  ;;  %v1749_v48 = vld [vmem:[#allocation6 + $0x2e4] ss:$8 sps:$4 sm:$0xff]   ;;  %v1812_v15 = vld [vmem:[#allocation6 + $0x394] ss:$8 sps:$4 sm:$0xff]   ;;  %v1816_v18 = vld [vmem:[#allocation6 + $0x3a0] ss:$8 sps:$4 sm:$0xff]  }
  0x6b   :  { %v103_v56 = vld [vmem:[#allocation3 + $0x60] sm:$0xff]  ;;  %v1860_v35 = vld [vmem:[#allocation8 + $0x28] sm:$0xff]   ;;  %v1861_v36 = vld [vmem:[#allocation8 + $0x70] sm:$0xff]  }
  0x6c   :  { %947 = vmatpush1.bf16.msra.mxu0 %v1683_v20  ;;  %900 = vmatpush1.bf16.msra.mxu1 %v1791_v59  ;;  %v1726_v20 = vld [vmem:[#allocation6 + $0x270] ss:$8 sps:$4 sm:$0xff]  }
  0x6d   :  { %948 = vmatprep.subr.bf16.mxu0 %v1684_v21  ;;  %901 = vmatprep.subr.bf16.mxu1 %v1795_v60  ;;  %v1731_v21 = vld [vmem:[#allocation6 + $0x284] ss:$8 sps:$4 sm:$0xff]   ;;  %v106_v59 = vld [vmem:[#allocation3 + $0x78] sm:$0xff]  ;;  %v111_v60 = vpack.c.bf16 %v103_v56, %v95_v55 }
  0x70   :  { %949 = vmatpush1.bf16.msra.mxu0 %v1686_v22  ;;  %902 = vmatpush1.bf16.msra.mxu1 %v1797_v63  ;;  %v1827_v22 = vld [vmem:[#allocation6 + $0xc0] ss:$8 sps:$4 sm:$0xff]   ;;  %v1764_v63 = vld [vmem:[#allocation6 + $0x314] ss:$8 sps:$4 sm:$0xff]  }
  0x71   :  { %950 = vmatprep.subr.bf16.mxu0 %v1687_v23  ;;  %903 = vmatprep.subr.bf16.mxu1 %v1801_v0  ;;  %v1831_v23 = vld [vmem:[#allocation6 + $0xd4] ss:$8 sps:$4 sm:$0xff]   ;;  %v1762_v0 = vld [vmem:[#allocation6 + $0x310] ss:$8 sps:$4 sm:$0xff]  }
  0x74   :  { %951 = vmatpush1.bf16.msra.mxu0 %v1689_v24  ;;  %904 = vmatpush1.bf16.msra.mxu1 %v1803_v3  ;;  %v1729_v24 = vld [vmem:[#allocation6 + $0x280] ss:$8 sps:$4 sm:$0xff]   ;;  %v1776_v3 = vld [vmem:[#allocation6 + $0x334] ss:$8 sps:$4 sm:$0xff]  }
  0x75   :  { %952 = vmatprep.subr.bf16.mxu0 %v1690_v25  ;;  %905 = vmatprep.subr.bf16.mxu1 %v1807_v4  ;;  %v1734_v25 = vld [vmem:[#allocation6 + $0x294] ss:$8 sps:$4 sm:$0xff]   ;;  %v1774_v4 = vld [vmem:[#allocation6 + $0x330] ss:$8 sps:$4 sm:$0xff]  }
  0x78   :  { %953 = vmatpush1.bf16.msra.mxu0 %v1692_v26  ;;  %906 = vmatpush1.bf16.msra.mxu1 %v1809_v7  ;;  %v1833_v26 = vld [vmem:[#allocation6 + $0xd0] ss:$8 sps:$4 sm:$0xff]   ;;  %v1788_v7 = vld [vmem:[#allocation6 + $0x354] ss:$8 sps:$4 sm:$0xff]  }
  0x79   :  { %954 = vmatprep.subr.bf16.mxu0 %v1693_v27  ;;  %907 = vmatprep.subr.bf16.mxu1 %v1813_v8  ;;  %v1732_v27 = vld [vmem:[#allocation6 + $0x290] ss:$8 sps:$4 sm:$0xff]  }
  0x7a   :  { %v1786_v8 = vld [vmem:[#allocation6 + $0x350] ss:$8 sps:$4 sm:$0xff]  }
  0x7c   :  { %955 = vmatpush1.bf16.msra.mxu0 %v1695_v30  ;;  %908 = vmatpush1.bf16.msra.mxu1 %v1815_v11  ;;  %v1839_v30 = vld [vmem:[#allocation6 + $0xe0] ss:$8 sps:$4 sm:$0xff]   ;;  %v1800_v11 = vld [vmem:[#allocation6 + $0x374] ss:$8 sps:$4 sm:$0xff]  }
  0x7d   :  { %956 = vmatprep.subr.bf16.mxu0 %v1696_v31  ;;  %909 = vmatprep.subr.bf16.mxu1 %v1819_v12  ;;  %v1843_v31 = vld [vmem:[#allocation6 + $0xf4] ss:$8 sps:$4 sm:$0xff]   ;;  %v1798_v12 = vld [vmem:[#allocation6 + $0x370] ss:$8 sps:$4 sm:$0xff]  }
  0x80   :  { %957 = vmatpush1.bf16.msra.mxu0 %v1698_v34  ;;  %910 = vmatpush1.bf16.msra.mxu1 %v1821_v17  ;;  %v1845_v34 = vld [vmem:[#allocation6 + $0xf0] ss:$8 sps:$4 sm:$0xff]   ;;  %v1818_v17 = vld [vmem:[#allocation6 + $0x3a4] ss:$8 sps:$4 sm:$0xff]  }
  0x81   :  { %958 = vmatprep.subr.bf16.mxu0 %v1699_v37  ;;  %911 = vmatprep.subr.bf16.mxu1 %v1825_v19  ;;  %v1849_v37 = vld [vmem:[#allocation8 + $0x40] sm:$0xff]   ;;  %v1824_v19 = vld [vmem:[#allocation6 + $0x3b4] ss:$8 sps:$4 sm:$0xff]  }
  0x84   :  { %959 = vmatpush1.bf16.msra.mxu0 %v1701_v38  ;;  %912 = vmatpush1.bf16.msra.mxu1 %v1827_v22  ;;  %v1738_v38 = vld [vmem:[#allocation6 + $0x2b0] ss:$8 sps:$4 sm:$0xff]   ;;  %v1828_v22 = vld [vmem:[#allocation6 + $0x3c0] ss:$8 sps:$4 sm:$0xff]  }
  0x85   :  { %960 = vmatprep.subr.bf16.mxu0 %v1702_v40  ;;  %913 = vmatprep.subr.bf16.mxu1 %v1831_v23  ;;  %v1850_v40 = vld [vmem:[#allocation8] sm:$0xff]   ;;  %v1836_v23 = vld [vmem:[#allocation6 + $0x3d4] ss:$8 sps:$4 sm:$0xff]  }
  0x88   :  { %961 = vmatpush1.bf16.msra.mxu0 %v1704_v43  ;;  %914 = vmatpush1.bf16.msra.mxu1 %v1833_v26  ;;  %v1741_v43 = vld [vmem:[#allocation6 + $0x2c0] ss:$8 sps:$4 sm:$0xff]  }
  0x89   :  { %973 = vmatprep.subr.bf16.mxu0 %v1707_v45  ;;  %915 = vmatprep.subr.bf16.mxu1 %v1837_v28  ;;  %v1852_v45 = vld [vmem:[#allocation8 + $0x8] sm:$0xff]   ;;  %v1846_v28 = vld [vmem:[#allocation6 + $0x3f0] ss:$8 sps:$4 sm:$0xff]  }
  0x8a   :  { %v1840_v26 = vld [vmem:[#allocation6 + $0x3e0] ss:$8 sps:$4 sm:$0xff]  }
  0x8b   :  { %963 = vmatmul.mubr.bf16.vlgmr.msra.gmra.mrb[0].mxu0 %v109_v51  ;;  %v1747_v51 = vld [vmem:[#allocation6 + $0x2e0] ss:$8 sps:$4 sm:$0xff]  }
  0x8c   :  { %974 = vmatpush1.bf16.msra.mxu0 %v1705_v52  ;;  %1005 = vmatprep.mubr.bf16.mxu0 %v112_v54  ;;  %v1752_v52 = vld [vmem:[#allocation6 + $0x2f4] ss:$8 sps:$4 sm:$0xff]   ;;  %v1750_v54 = vld [vmem:[#allocation6 + $0x2f0] ss:$8 sps:$4 sm:$0xff]  }
  0x8d   :  { %975 = vmatprep.subr.bf16.mxu0 %v1710_v53  ;;  %916 = vmatpush1.bf16.msra.mxu1 %v1839_v30  ;;  %v1856_v53 = vld [vmem:[#allocation8 + $0x18] sm:$0xff]   ;;  %v105_v30 = vld [vmem:[#allocation3 + $0x70] sm:$0xff] }
  0x8e   :  { %917 = vmatprep.subr.bf16.mxu1 %v1843_v31 }
  0x90   :  { %976 = vmatpush1.bf16.msra.mxu0 %v1708_v57  ;;  %v1758_v57 = vld [vmem:[#allocation6 + $0x304] ss:$8 sps:$4 sm:$0xff]  }
  0x91   :  { %977 = vmatprep.subr.bf16.mxu0 %v1713_v58  ;;  %918 = vmatpush1.bf16.msra.mxu1 %v1845_v34  ;;  %v98_v58 = vld [vmem:[#allocation3 + $0x38] sm:$0xff]  ;;  %v1859_v34 = vld [vmem:[#allocation8 + $0x68] sm:$0xff]  }
  0x92   :  { %1582 = vmatprep.subr.bf16.mxu1 %v1849_v37  ;;  %v1862_v37 = vld [vmem:[#allocation8 + $0x30] sm:$0xff]  }
  0x94   :  { %978 = vmatpush1.bf16.msra.mxu0 %v1711_v61  ;;  %920 = vmatmul.mubr.bf16.vlgmr.msra.gmra.mrb[0].mxu1 %v107_v41  ;;  %v1756_v61 = vld [vmem:[#allocation6 + $0x300] ss:$8 sps:$4 sm:$0xff]  }
  0x95   :  { %979 = vmatprep.subr.bf16.mxu0 %v1716_v62  ;;  %1583 = vmatpush3.bf16.msra.mxu1 %v1850_v40  ;;  %v114_v62 = vpack.c.bf16 %v106_v59, %v98_v58  ;;  %v2008_v40 = vmov 0.0  }
  0x96   :  { %1584 = vmatprep.subr.bf16.mxu1 %v1851_v42 }
  0x98   :  { %980 = vmatpush1.bf16.msra.mxu0 %v1714_v1  ;;  %v1770_v1 = vld [vmem:[#allocation6 + $0x324] ss:$8 sps:$4 sm:$0xff]  }
  0x99   :  { %981 = vmatprep.subr.bf16.mxu0 %v1719_v2  ;;  %1585 = vmatpush3.bf16.msra.mxu1 %v1852_v45  ;;  %v1768_v2 = vld [vmem:[#allocation6 + $0x320] ss:$8 sps:$4 sm:$0xff]   ;;  %v1076_v45 = vlaneseq }
  0x9a   :  { %1586 = vmatprep.subr.bf16.mxu1 %v1853_v46 }
  0x9b   :  { %v1077_v46 = vshrl.u32 %v1076_v45, 7 }
  0x9c   :  { %982 = vmatpush1.bf16.msra.mxu0 %v1717_v5  ;;  %v1782_v5 = vld [vmem:[#allocation6 + $0x344] ss:$8 sps:$4 sm:$0xff]  }
  0x9d   :  { %983 = vmatprep.subr.bf16.mxu0 %v1722_v6  ;;  %1587 = vmatpush3.bf16.msra.mxu1 %v1854_v49  ;;  %v1780_v6 = vld [vmem:[#allocation6 + $0x340] ss:$8 sps:$4 sm:$0xff]   ;;  %v1082_v49 = vsub.s32 1, %v1077_v46 }
  0x9e   :  { %1588 = vmatprep.subr.bf16.mxu1 %v1855_v50 }
  0xa0   :  { %984 = vmatpush1.bf16.msra.mxu0 %v1720_v9  ;;  %v1794_v9 = vld [vmem:[#allocation6 + $0x364] ss:$8 sps:$4 sm:$0xff]  }
  0xa1   :  { %985 = vmatprep.subr.bf16.mxu0 %v1725_v10  ;;  %1589 = vmatpush3.bf16.msra.mxu1 %v1856_v53  ;;  %v1792_v10 = vld [vmem:[#allocation6 + $0x360] ss:$8 sps:$4 sm:$0xff]  }
  0xa4   :  { %986 = vmatpush1.bf16.msra.mxu0 %v1723_v13  ;;  %v1806_v13 = vld [vmem:[#allocation6 + $0x384] ss:$8 sps:$4 sm:$0xff]  }
  0xa5   :  { %987 = vmatprep.subr.bf16.mxu0 %v1728_v16  ;;  %v1810_v16 = vld [vmem:[#allocation6 + $0x390] ss:$8 sps:$4 sm:$0xff]  }
  0xa8   :  { %988 = vmatpush1.bf16.msra.mxu0 %v1726_v20  ;;  %v1822_v20 = vld [vmem:[#allocation6 + $0x3b0] ss:$8 sps:$4 sm:$0xff]  }
  0xa9   :  { %989 = vmatprep.subr.bf16.mxu0 %v1731_v21  ;;  %v1830_v21 = vld [vmem:[#allocation6 + $0x3c4] ss:$8 sps:$4 sm:$0xff]  }
  0xac   :  { %990 = vmatpush1.bf16.msra.mxu0 %v1729_v24  ;;  %v1834_v24 = vld [vmem:[#allocation6 + $0x3d0] ss:$8 sps:$4 sm:$0xff]  }
  0xad   :  { %991 = vmatprep.subr.bf16.mxu0 %v1734_v25  ;;  %v1842_v25 = vld [vmem:[#allocation6 + $0x3e4] ss:$8 sps:$4 sm:$0xff]  }
  0xb0   :  { %992 = vmatpush1.bf16.msra.mxu0 %v1732_v27  ;;  %v1848_v27 = vld [vmem:[#allocation6 + $0x3f4] ss:$8 sps:$4 sm:$0xff]  }
  0xb1   :  { %993 = vmatprep.subr.bf16.mxu0 %v1737_v29  ;;  %v97_v29 = vld [vmem:[#allocation3 + $0x30] sm:$0xff] }
  0xb2   :  { %v113_v31 = vpack.c.bf16 %v105_v30, %v97_v29 }
  0xb4   :  { %994 = vmatpush1.bf16.msra.mxu0 %v1735_v32  ;;  %v1857_v32 = vld [vmem:[#allocation8 + $0x60] sm:$0xff]  }
  0xb5   :  { %995 = vmatprep.subr.bf16.mxu0 %v1740_v33  ;;  %v1858_v33 = vld [vmem:[#allocation8 + $0x20] sm:$0xff]   ;;  %1590 = vmatprep.subr.bf16.mxu1 %v1857_v32 }
  0xb6   :  { %1591 = vmatpush3.bf16.msra.mxu1 %v1858_v33 }
  0xb7   :  { %1592 = vmatprep.subr.bf16.mxu1 %v1859_v34 }
  0xb8   :  { %996 = vmatpush1.bf16.msra.mxu0 %v1738_v38  ;;  %v1863_v38 = vld [vmem:[#allocation8 + $0x78] sm:$0xff]  }
  0xb9   :  { %997 = vmatprep.subr.bf16.mxu0 %v1743_v39  ;;  %v1864_v39 = vld [vmem:[#allocation8 + $0x38] sm:$0xff]  }
  0xba   :  { %1593 = vmatpush3.bf16.msra.mxu1 %v1860_v35 }
  0xbb   :  { %1594 = vmatprep.subr.bf16.mxu1 %v1861_v36 }
  0xbc   :  { %998 = vmatpush1.bf16.msra.mxu0 %v1741_v43 }
  0xbd   :  { %999 = vmatprep.subr.bf16.mxu0 %v1746_v44 }
  0xbe   :  { %1595 = vmatpush3.bf16.msra.mxu1 %v1862_v37 }
  0xbf   :  { %1596 = vmatprep.subr.bf16.mxu1 %v1863_v38 }
  0xc0   :  { %1000 = vmatpush1.bf16.msra.mxu0 %v1744_v47  ;;  %v1078_v47 = vsub.s32 0, %v1077_v46 }
  0xc1   :  { %1001 = vmatprep.subr.bf16.mxu0 %v1749_v48  ;;  %v1074_v48 = vld [vmem:[%s2133_s2] sm:$0x3] }
  0xc2   :  { %1597 = vmatpush3.bf16.msra.mxu1 %v1864_v39  ;;  %v1079_v50 = vrot.slane %v1074_v48, %v1078_v47 }
  0xc3   :  { %1613 = vmatprep.subr.bf16.mxu1 %v2008_v40 }
  0xc4   :  { %1002 = vmatpush1.bf16.msra.mxu0 %v1747_v51 }
  0xc5   :  { %1003 = vmatprep.subr.bf16.mxu0 %v1752_v52  ;;  %v1083_v52 = vrot.slane %v1074_v48, %v1082_v49 }
  0xc8   :  { %1004 = vmatpush1.bf16.msra.mxu0 %v1750_v54 }
  0xc9   :  { %1016 = vmatprep.subr.bf16.mxu0 %v1758_v57 }
  0xcb   :  { %1006 = vmatmul.mubr.bf16.vlgmr.msra.gmra.mrb[0].mxu0 %v111_v60 }
  0xcc   :  { %1017 = vmatpush1.bf16.msra.mxu0 %v1756_v61  ;;  %1048 = vmatprep.mubr.bf16.mxu0 %v114_v62 }
  0xcd   :  { %1018 = vmatprep.subr.bf16.mxu0 %v1764_v63 }
  0xd0   :  { %1019 = vmatpush1.bf16.msra.mxu0 %v1762_v0 }
  0xd1   :  { %1020 = vmatprep.subr.bf16.mxu0 %v1770_v1 }
  0xd4   :  { %1021 = vmatpush1.bf16.msra.mxu0 %v1768_v2 }
  0xd5   :  { %1022 = vmatprep.subr.bf16.mxu0 %v1776_v3 }
  0xd8   :  { %1023 = vmatpush1.bf16.msra.mxu0 %v1774_v4 }
  0xd9   :  { %1024 = vmatprep.subr.bf16.mxu0 %v1782_v5 }
  0xdc   :  { %1025 = vmatpush1.bf16.msra.mxu0 %v1780_v6  ;;  %v1865_v6 = vld [vmem:[#allocation9] sm:$0xff]  }
  0xdd   :  { %1026 = vmatprep.subr.bf16.mxu0 %v1788_v7  ;;  %v1866_v7 = vld [vmem:[#allocation9 + $0x8] sm:$0xff]  }
  0xe0   :  { %1027 = vmatpush1.bf16.msra.mxu0 %v1786_v8  ;;  %v1867_v8 = vld [vmem:[#allocation9 + $0x10] sm:$0xff]  }
  0xe1   :  { %1028 = vmatprep.subr.bf16.mxu0 %v1794_v9  ;;  %v1868_v9 = vld [vmem:[#allocation9 + $0x18] sm:$0xff]  }
  0xe4   :  { %1029 = vmatpush1.bf16.msra.mxu0 %v1792_v10  ;;  %v1869_v10 = vld [vmem:[#allocation9 + $0x20] sm:$0xff]  }
  0xe5   :  { %1030 = vmatprep.subr.bf16.mxu0 %v1800_v11  ;;  %v1870_v11 = vld [vmem:[#allocation9 + $0x28] sm:$0xff]  }
  0xe8   :  { %1031 = vmatpush1.bf16.msra.mxu0 %v1798_v12  ;;  %v1871_v12 = vld [vmem:[#allocation9 + $0x30] sm:$0xff]  }
  0xe9   :  { %1032 = vmatprep.subr.bf16.mxu0 %v1806_v13  ;;  %v1872_v13 = vld [vmem:[#allocation9 + $0x38] sm:$0xff]  }
  0xec   :  { %1033 = vmatpush1.bf16.msra.mxu0 %v1804_v14 }
  0xed   :  { %1034 = vmatprep.subr.bf16.mxu0 %v1812_v15  ;;  %v1556_v15 = vld [vmem:[%s2135_s4] ss:$0 sm:$0xff]  ;;  %s2010_s4 = smov [#allocation11]  }
  0xf0   :  { %1035 = vmatpush1.bf16.msra.mxu0 %v1810_v16 }
  0xf1   :  { %1036 = vmatprep.subr.bf16.mxu0 %v1818_v17 }
  0xf4   :  { %1037 = vmatpush1.bf16.msra.mxu0 %v1816_v18 }
  0xf5   :  { %1038 = vmatprep.subr.bf16.mxu0 %v1824_v19 }
  0xf8   :  { %1039 = vmatpush1.bf16.msra.mxu0 %v1822_v20 }
  0xf9   :  { %1040 = vmatprep.subr.bf16.mxu0 %v1830_v21 }
  0xfc   :  { %1041 = vmatpush1.bf16.msra.mxu0 %v1828_v22 }
  0xfd   :  { %1042 = vmatprep.subr.bf16.mxu0 %v1836_v23 }
 0x100   :  { %1043 = vmatpush1.bf16.msra.mxu0 %v1834_v24 }
 0x101   :  { %1044 = vmatprep.subr.bf16.mxu0 %v1842_v25 }
 0x104   :  { %1045 = vmatpush1.bf16.msra.mxu0 %v1840_v26  ;;  %v1573_v26 = vld [vmem:[%s2137_s6] ss:$0 sm:$0xff]  ;;  %s1414_s6 = sshll.u32 %s2010_s4, 4  ;;  %s1415_s6 = int_to_ptr.vmem [resolvable:$true] %s1414_s6 }
 0x105   :  { %1046 = vmatprep.subr.bf16.mxu0 %v1848_v27  ;;  %s1969_s10 = scalar_lea.vmem %s1415_s6, 256  ;;  %p1974_p5 = scmp.lt.s32.totalorder %s1415_s6, %s1415_s6 }
 0x106   :  { %p1970_p4 = scmp.ne.s32.totalorder %s1415_s6, %s1969_s10  ;;  %p1975_p6 = scmp.lt.s32.totalorder %s1969_s10, %s1969_s10 }
 0x108   :  { %1047 = vmatpush1.bf16.msra.mxu0 %v1846_v28  ;;  %p1976_p7 = por %p1975_p6, %p1974_p5 }
 0x10a   :  { %p1977_p8 = pnand %p1976_p7, %p1970_p4 }
 0x10b   :  { %1049 = vmatmul.mubr.bf16.vlgmr.msra.gmra.mrb[0].mxu0 %v113_v31 }
 0x167   :  { %v921_v41 = vpop.f32.mrb[0].mxu1 }
 0x168   :  { %v923_v42 = vpop.f32.mrb[1].mxu1 }
 0x169   :  { %v925_v43 = vpop.f32.mrb[2].mxu1 }
 0x16a   :  { %v927_v44 = vpop.f32.mrb[3].mxu1 }
 0x1de   :  { %v1050_v51 = vpop.f32.mrb[0].mxu0 }
 0x1df   :  { %v1633_v53 = vadd.f32 %v1050_v51, %v921_v41  ;;  %v1052_v54 = vpop.f32.mrb[1].mxu0 }
 0x1e0   :  { %v1634_v55 = vadd.f32 %v1052_v54, %v923_v42  ;;  %v1054_v56 = vpop.f32.mrb[2].mxu0 }
 0x1e1   :  { %v1086_v57 = vadd.f32 %v1633_v53, %v1079_v50  ;;  %v1635_v58 = vadd.f32 %v1054_v56, %v925_v43  ;;  %v1056_v59 = vpop.f32.mrb[3].mxu0 }
 0x1e2   :  { %v1087_v60 = vadd.f32 %v1634_v55, %v1083_v52  ;;  %v1636_v61 = vadd.f32 %v1056_v59, %v927_v44 }
 0x1e3   :  { %v1088_v62 = vadd.f32 %v1635_v58, %v1079_v50  ;;  %v1090_v0 = vmax.f32 %v1086_v57, 0.0 }
 0x1e4   :  { %v1089_v63 = vadd.f32 %v1636_v61, %v1083_v52  ;;  %v1091_v2 = vmax.f32 %v1087_v60, 0.0 }
 0x1e5   :  { %v1092_v1 = vmax.f32 %v1088_v62, 0.0 }
 0x1e6   :  { %v1093_v3 = vmax.f32 %v1089_v63, 0.0 }
 0x1e7   :  { %v1094_v4 = vpack.c.bf16 %v1092_v1, %v1090_v0 }
 0x1e8   :  { %v1095_v5 = vpack.c.bf16 %v1093_v3, %v1091_v2 }
 0x1ea   :  { %1263 = vmatprep.mubr.bf16.mxu1 %v1095_v5 }
 0x1eb   :  { %1264 = vmatmul.mubr.bf16.vlgmr.msra.gmra.mrb[4].mxu1 %v1094_v4 }
 0x1ec   :  { %1614 = vmatpush3.bf16.msra.mxu1 %v1865_v6  ;;  %1629 = vmatprep.mubr.msk.bf16.mxu1 %vm2009_vm0, %v2008_v40 }
 0x1ed   :  { %1615 = vmatprep.subr.bf16.mxu1 %v2008_v40 }
 0x1f0   :  { %1616 = vmatpush3.bf16.msra.mxu1 %v1866_v7 }
 0x1f1   :  { %1617 = vmatprep.subr.bf16.mxu1 %v2008_v40 }
 0x1f4   :  { %1618 = vmatpush3.bf16.msra.mxu1 %v1867_v8 }
 0x1f5   :  { %1619 = vmatprep.subr.bf16.mxu1 %v2008_v40 }
 0x1f8   :  { %1620 = vmatpush3.bf16.msra.mxu1 %v1868_v9 }
 0x1f9   :  { %1621 = vmatprep.subr.bf16.mxu1 %v2008_v40 }
 0x1fc   :  { %1622 = vmatpush3.bf16.msra.mxu1 %v1869_v10 }
 0x1fd   :  { %1623 = vmatprep.subr.bf16.mxu1 %v2008_v40 }
 0x200   :  { %1624 = vmatpush3.bf16.msra.mxu1 %v1870_v11 }
 0x201   :  { %1625 = vmatprep.subr.bf16.mxu1 %v2008_v40 }
 0x204   :  { %1626 = vmatpush3.bf16.msra.mxu1 %v1871_v12 }
 0x205   :  { %1627 = vmatprep.subr.bf16.mxu1 %v2008_v40 }
 0x208   :  { %1628 = vmatpush3.bf16.msra.mxu1 %v1872_v13 }
 0x2be   :  { %v1598_v14 = vpop.f32.mrb[4].mxu1 }
 0x2bf   :  { %v1599_v16 = vpop.f32.mrb[5].mxu1 }
 0x2c0   :  { %v1600_v17 = vadd.f32 %v1599_v16, %v1598_v14  ;;  %v1601_v18 = vpop.f32.mrb[6].mxu1 }
 0x2c1   :  { %v1602_v19 = vpop.f32.mrb[7].mxu1 }
 0x2c2   :  { %v1266_v20 = vadd.f32 %v1600_v17, %v1556_v15  ;;  %v1603_v21 = vadd.f32 %v1602_v19, %v1601_v18 }
 0x2c4   :  { %v1269_v22 = vadd.f32 %v1603_v21, %v1556_v15  ;;  %v1272_v23 = vmax.f32 %v1266_v20, 0.0 }
 0x2c6   :  { %v1273_v24 = vmax.f32 %v1269_v22, 0.0 }
 0x2c8   :  { %v1274_v25 = vpack.c.bf16 %v1273_v24, %v1272_v23 }
 0x2ca   :  { %1630 = vmatmul.mubr.bf16.vlgmr.msra.gmra.mrb[8].mxu1 %v1274_v25 }
 0x39d   :  { %v1380_v27 = vpop.f32.mrb[8].mxu1 }
 0x39e   :  { %v1381_v28 = vadd.f32 %v1573_v26, %v1380_v27  ;;  %v1631_v29 = vpop.f32.mrb[9].mxu1 }
 0x39f   :  { %v1383_v30 = vpop.f32.mrb[10].mxu1 }
 0x3a0   :  { %1387 = vmax.xlane.f32.xlu0 %v1381_v28  ;;  %v1632_v31 = vpop.f32.mrb[11].mxu1  ;;  %v1384_v32 = vadd.f32 %v1573_v26, %v1383_v30 }
 0x3a4   :  { %1389 = vmax.xlane.f32.xlu0 %v1384_v32 }
 0x42d   :  { %v1388_v33 = vpop.xlane.xlu0 %1387 }
 0x42e   :  { %v1391_v34 = vsub.f32 %v1381_v28, %v1388_v33 }
 0x430   :  { %v1393_v35 = vmul.f32 1.442695, %v1391_v34 }
 0x431   :  { %v1390_v36 = vpop.xlane.xlu0 %1389 }
 0x432   :  { %v1392_v37 = vsub.f32 %v1384_v32, %v1390_v36  ;;  %1873 = vpow2.f32 %v1393_v35 }
 0x434   :  { %v1395_v38 = vmul.f32 1.442695, %v1392_v37 }
 0x436   :  { %1875 = vpow2.f32 %v1395_v38 }
 0x43c   :  { %v1874_v39 = vpop.eup %1873 }
 0x43d   :  { %1397 = vadd.xlane.f32.xlu1 %v1874_v39 }
 0x440   :  { %v1876_v40 = vpop.eup %1875 }
 0x441   :  { %1399 = vadd.xlane.f32.xlu1 %v1876_v40 }
 0x4ca   :  { %v1398_v41 = vpop.xlane.xlu1 %1397 }
 0x4cb   :  { %1877 = vlog2.f32 %v1398_v41 }
 0x4ce   :  { %v1400_v42 = vpop.xlane.xlu1 %1399 }
 0x4cf   :  { %1879 = vlog2.f32 %v1400_v42 }
 0x4d5   :  { %v1878_v43 = vpop.eup %1877 }
 0x4d6   :  { %v1402_v44 = vmul.f32 0.6931472, %v1878_v43 }
 0x4d8   :  { %v1405_v45 = vsub.f32 %v1391_v34, %v1402_v44 }
 0x4d9   :  { %v1880_v46 = vpop.eup %1879 }
 0x4da   :  { %1407 = vst [vmem:[#allocation11] sm:$0xff] %v1405_v45  ;;  %v1404_v47 = vmul.f32 0.6931472, %v1880_v46 }
 0x4dc   :  { %v1406_v48 = vsub.f32 %v1392_v37, %v1404_v47 }
 0x4de   :  { %1408 = vst [vmem:[#allocation11 + $0x8] sm:$0xff] %v1406_v48 }
 0x4df   :  { %1980 = shalt.err (!%p1977_p8)
}
 0x4e0   :  { %s1981_s15 = scalar_lea.hbm %s2138_s7, 256 }
 0x4e1   :  { %p1982_p9 = scmp.ne.s32.totalorder %s2138_s7, %s1981_s15  ;;  %p1985_p10 = scmp.lt.u32.totalorder %s1981_s15, %s2138_s7 }
 0x4e3   :  { %p1987_p11 = pnand %p1985_p10, %p1982_p9 }
 0x4e5   :  { %1990 = shalt.err (!%p1987_p11)
}
 0x4e6   :  { %1420 = dma.vmem_to_hbm [thread:$0]  %s1415_s6, 256, %s2138_s7, [#allocation5], %s2000_s11, %s2000_s11, %s2001_s12  }
 0x4e7   :  { %1997 = dma.done.wait [#allocation5], 256  }
 0x4e8   :  { %1998 = vsyncadd [#allocation5], 4294967040 }
 0x4e9   :  { %1424 = vsyncpa [#allocation4], 1 }
 0x4ea   :  { %1425 = vsyncpa [#allocation7], 1 }
 0x4eb   :  { %1426 = vsyncpa [#allocation10], 1 }
 0x4ec   :  { %1427 = vsyncpa [#allocation5], 1 }

</bundles_post_ra>
